<compile_context>
chip_gen: v7x
topology: tpu7x:2x2x1
jax: 0.10.0
libtpu: 0.0.40
codegen_flags: <defaults>
</compile_context>

<pallas_src>
import functools

import jax
import jax.numpy as jnp
from jax.experimental import pallas as pl
from jax.experimental.pallas import tpu as pltpu


# ----------------------------- small helpers --------------------------------

_K_SPLIT = 2048  # max contraction tile before adding a K-reduction grid axis


def _round_up(n, m):
    return ((n + m - 1) // m) * m


def _chip_config():
    """Generation-aware tiling knobs (heuristic; correctness never depends on it)."""
    try:
        kind = jax.devices()[0].device_kind.lower()
    except Exception:
        kind = ""
    if "v5e" in kind or "v5 lite" in kind or "v5lite" in kind:
        # 1 TC, 4x128^2 MXU, 128 MiB physical VMEM (16 MiB default scoped).
        return dict(num_tc=1, mxu_align=128, max_tile=512, vmem_limit=64 << 20)
    if "v6" in kind:
        # 1 TC, 2x256^2 MXU, 128 MiB physical VMEM (32 MiB default scoped).
        return dict(num_tc=1, mxu_align=256, max_tile=1024, vmem_limit=96 << 20)
    if "v7" in kind or "7x" in kind:
        # 2 TCs, 2x256^2 MXU, only 64 MiB VMEM -> keep headroom.
        return dict(num_tc=2, mxu_align=256, max_tile=512, vmem_limit=48 << 20)
    # v2/v3/v4/v5p/unknown: assume megacore, conservative defaults.
    return dict(num_tc=2, mxu_align=128, max_tile=512, vmem_limit=None)


def _pick_row_tile(rows, cfg):
    if rows <= 8:
        return 8
    # On single-TC chips take the whole thing in one step (no forced split);
    # on multi-TC chips aim for one tile per core so "parallel" actually shards.
    target = pl.cdiv(rows, cfg["num_tc"])
    tile = min(cfg["max_tile"], _round_up(target, 8))
    if tile >= cfg["mxu_align"]:
        tile = (tile // cfg["mxu_align"]) * cfg["mxu_align"]  # fill the MXU
    return max(8, tile)


def _k_tiling(k_raw):
    """(tk, num_k_tiles, K_pad) with K_pad a multiple of 128 and of tk."""
    kt = max(1, pl.cdiv(k_raw, _K_SPLIT))
    tk = _round_up(pl.cdiv(k_raw, kt), 128)
    return tk, kt, tk * kt


# ----------------------------- Pallas kernels --------------------------------

def _matmul_bias_kernel(x_ref, w_ref, b_ref, o_ref):
    # bf16 x bf16 -> f32 accumulate on the MXU, bias add in f32.
    acc = jnp.dot(x_ref[...], w_ref[...], preferred_element_type=jnp.float32)
    o_ref[...] = (acc + b_ref[...].astype(jnp.float32)).astype(o_ref.dtype)


def _matmul_bias_acc_kernel(x_ref, w_ref, b_ref, o_ref, acc_ref):
    # K-split variant: f32 VMEM accumulator, init/finalize via pl.when.
    @pl.when(pl.program_id(1) == 0)
    def _():
        acc_ref[...] = jnp.zeros_like(acc_ref)

    acc_ref[...] += jnp.dot(x_ref[...], w_ref[...],
                            preferred_element_type=jnp.float32)

    @pl.when(pl.program_id(1) == pl.num_programs(1) - 1)
    def _():
        o_ref[...] = (acc_ref[...] + b_ref[...].astype(jnp.float32)
                      ).astype(o_ref.dtype)


def pallas_matmul_bias(x, w, b, *, tk=None, out_dtype=jnp.float32):
    """y = x @ w + b. x:(N,K) (bf16), w:(K,Cout) (bf16), b:(Cout,) f32.

    K must be a multiple of tk (the wrapper zero-pads K accordingly), so the
    reduction axis never relies on out-of-bounds masking.  The row axis uses
    grid=cdiv(N, tile) with a masked partial last block (rows independent).
    """
    n, k = x.shape
    k2, cout = w.shape
    assert k == k2
    if tk is None or tk >= k:
        tk = k
    assert k % tk == 0
    kt = k // tk

    bias = b.astype(jnp.float32).reshape(1, cout)

    cfg = _chip_config()
    in_bytes = x.dtype.itemsize
    w_bytes = w.dtype.itemsize
    out_bytes = jnp.dtype(out_dtype).itemsize

    tile = _pick_row_tile(n, cfg)

    # VMEM budget guard: double-buffered x / w / bias / out blocks (+ f32 acc).
    budget = int(0.7 * (cfg["vmem_limit"] or (32 << 20)))

    def vmem_need(t):
        return (2 * t * tk * in_bytes + 2 * tk * cout * w_bytes
                + 2 * cout * 4 + 2 * t * cout * out_bytes
                + (t * cout * 4 if kt > 1 else 0))

    while tile > 8 and vmem_need(tile) > budget:
        tile = max(8, _round_up(tile // 2, 8))

    grid_n = pl.cdiv(n, tile)
    cost = pl.CostEstimate(
        flops=2 * n * k * cout,
        transcendentals=0,
        bytes_accessed=(n * k * in_bytes + k * cout * w_bytes
                        + cout * 4 + n * cout * out_bytes))

    cp_kwargs = {}
    if cfg["vmem_limit"] is not None:
        cp_kwargs["vmem_limit_bytes"] = int(cfg["vmem_limit"])

    if kt == 1:
        return pl.pallas_call(
            _matmul_bias_kernel,
            out_shape=jax.ShapeDtypeStruct((n, cout), out_dtype),
            grid=(grid_n,),
            in_specs=[
                pl.BlockSpec((tile, k), lambda i: (i, 0)),
                pl.BlockSpec((k, cout), lambda i: (0, 0)),
                # (1, Cout) satisfies the (8,128) rule only because it equals
                # the full bias array dims -- do not turn this into a tile.
                pl.BlockSpec((1, cout), lambda i: (0, 0)),
            ],
            out_specs=pl.BlockSpec((tile, cout), lambda i: (i, 0)),
            compiler_params=pltpu.CompilerParams(
                dimension_semantics=("parallel",), **cp_kwargs),
            cost_estimate=cost,
        )(x, w, bias)

    return pl.pallas_call(
        _matmul_bias_acc_kernel,
        out_shape=jax.ShapeDtypeStruct((n, cout), out_dtype),
        grid=(grid_n, kt),
        in_specs=[
            pl.BlockSpec((tile, tk), lambda i, kk: (i, kk)),
            pl.BlockSpec((tk, cout), lambda i, kk: (kk, 0)),
            pl.BlockSpec((1, cout), lambda i, kk: (0, 0)),
        ],
        out_specs=pl.BlockSpec((tile, cout), lambda i, kk: (i, 0)),
        scratch_shapes=[pltpu.VMEM((tile, cout), jnp.float32)],
        compiler_params=pltpu.CompilerParams(
            dimension_semantics=("parallel", "arbitrary"), **cp_kwargs),
        cost_estimate=cost,
    )(x, w, bias)


# -------------------------- CrossEmbedLayer pieces ---------------------------

def _conv_out_size(size, k, stride, pad):
    return (size + 2 * pad - k) // stride + 1


def _im2col_largest(x_nhwc, k_max, stride, k_pad_to):
    """Channels-last im2col for the largest (centered) kernel, zero-padded to K_pad.

    Built directly in the input's (bf16) dtype; the K zero-padding is appended
    inside the same concatenate, so no extra HBM copy is materialized.
    """
    b, h, w, c = x_nhwc.shape
    pad = (k_max - stride) // 2
    ho = _conv_out_size(h, k_max, stride, pad)
    wo = _conv_out_size(w, k_max, stride, pad)
    xp = jnp.pad(x_nhwc, ((0, 0), (pad, pad), (pad, pad), (0, 0)))
    cols = []
    for di in range(k_max):
        for dj in range(k_max):
            cols.append(
                xp[:, di:di + (ho - 1) * stride + 1:stride,
                      dj:dj + (wo - 1) * stride + 1:stride, :])
    k_raw = k_max * k_max * c
    if k_pad_to > k_raw:
        cols.append(jnp.zeros((b, ho, wo, k_pad_to - k_raw), x_nhwc.dtype))
    patches = jnp.concatenate(cols, axis=-1)        # (B,Ho,Wo, K_pad)
    return patches.reshape(b * ho * wo, k_pad_to), ho, wo


def build_combined_weight(branches, kernel_sizes, k_max, stride, dim_in,
                          k_pad_to, compute_dtype=jnp.bfloat16):
    """Embed each branch's (d, Cin, k, k) weight into ONE (K_pad, dim_out) matrix.

    Rows follow im2col order (di, dj, cin); columns follow torch.cat order, so
    the kernel writes the concatenated lane-dense output directly.  Run this
    ONCE outside the per-call jit (weights are static).
    """
    pad_max = (k_max - stride) // 2
    dim_out = sum(br['w'].shape[0] for br in branches)
    w_big = jnp.zeros((k_max, k_max, dim_in, dim_out), jnp.float32)
    b_all = []
    col = 0
    for br, k in zip(branches, kernel_sizes):
        w = br['w']                                    # (d, Cin, k, k)
        d = w.shape[0]
        off = pad_max - (k - stride) // 2              # centered sub-window
        wt = jnp.transpose(w, (2, 3, 1, 0))            # (k, k, Cin, d)
        w_big = w_big.at[off:off + k, off:off + k, :, col:col + d].set(wt)
        b_all.append(br['b'])
        col += d
    w_mat = w_big.reshape(k_max * k_max * dim_in, dim_out)
    k_raw = w_mat.shape[0]
    if k_pad_to > k_raw:
        w_mat = jnp.pad(w_mat, ((0, k_pad_to - k_raw), (0, 0)))
    return w_mat.astype(compute_dtype), jnp.concatenate(b_all).astype(jnp.float32)


def cross_embed_forward(w_comb, b_comb, x_nchw, kernel_sizes, stride,
                        compute_dtype=jnp.bfloat16):
    kernel_sizes = sorted(kernel_sizes)
    k_max = kernel_sizes[-1]
    b, c, h, w = x_nchw.shape

    pad_max = (k_max - stride) // 2
    ho = _conv_out_size(h, k_max, stride, pad_max)
    wo = _conv_out_size(w, k_max, stride, pad_max)
    for k in kernel_sizes:                 # torch.cat requires equal fmap sizes
        p = (k - stride) // 2
        assert _conv_out_size(h, k, stride, p) == ho
        assert _conv_out_size(w, k, stride, p) == wo

    tk, _kt, k_pad = _k_tiling(k_max * k_max * c)
    assert w_comb.shape[0] == k_pad, "combined weight / K tiling mismatch"

    # Cast to bf16 BEFORE im2col: the patch matrix is (k_max/stride)^2 x larger
    # than the input, so building it in bf16 halves the dominant HBM traffic.
    x_nhwc = jnp.transpose(x_nchw, (0, 2, 3, 1)).astype(compute_dtype)
    rows, ho, wo = _im2col_largest(x_nhwc, k_max, stride, k_pad)

    out_rows = pallas_matmul_bias(rows, w_comb.astype(compute_dtype), b_comb,
                                  tk=tk, out_dtype=x_nchw.dtype)
    out = out_rows.reshape(b, ho, wo, -1)
    return jnp.transpose(out, (0, 3, 1, 2))            # NCHW at the boundary


# ------------------------------- param init ----------------------------------

def init_cross_embed_params(key, dim_in, dim_out, kernel_sizes):
    kernel_sizes = sorted(kernel_sizes)
    ns = len(kernel_sizes)
    dim_scales = [int(dim_out / 2 ** i) for i in range(1, ns)]
    dim_scales = dim_scales + [dim_out - sum(dim_scales)]
    convs = []
    for k, d in zip(kernel_sizes, dim_scales):
        key, kw, kb = jax.random.split(key, 3)
        fan_in = dim_in * k * k
        bound = 1.0 / (fan_in ** 0.5)       # torch Conv2d default U(-bound, bound)
        w = jax.random.uniform(kw, (d, dim_in, k, k), jnp.float32, -bound, bound)
        bias = jax.random.uniform(kb, (d,), jnp.float32, -bound, bound)
        convs.append(dict(w=w, b=bias))
    return dict(convs=convs)


# --------------------------- pure-JAX reference -------------------------------

def cross_embed_reference(params, x, kernel_sizes, stride):
    kernel_sizes = sorted(kernel_sizes)
    outs = []
    for br, k in zip(params['convs'], kernel_sizes):
        pad = (k - stride) // 2
        y = jax.lax.conv_general_dilated(
            x, br['w'], window_strides=(stride, stride),
            padding=((pad, pad), (pad, pad)),
            dimension_numbers=('NCHW', 'OIHW', 'NCHW'),
            precision=jax.lax.Precision.HIGHEST)
        outs.append(y + br['b'][None, :, None, None])
    return jnp.concatenate(outs, axis=1)


# ----------------------------------- main -------------------------------------

if __name__ == "__main__":
    root = jax.random.PRNGKey(0)
    k_par, k_in = jax.random.split(root)

    B, C_IN, H, W = 2, 4, 32, 32
    DIM_OUT = 128                 # lane-dense concat target (2 branches of 64)
    KERNELS = (4, 8)
    STRIDE = 4

    params = init_cross_embed_params(k_par, C_IN, DIM_OUT, KERNELS)
    x = jax.random.normal(k_in, (B, C_IN, H, W), jnp.float32)

    # Weight combine hoisted out of the per-call jit (static, runs once).
    kernel_sizes = tuple(sorted(KERNELS))
    k_max = kernel_sizes[-1]
    _tk, _kt, k_pad = _k_tiling(k_max * k_max * C_IN)
    w_comb, b_comb = build_combined_weight(
        params['convs'], kernel_sizes, k_max, STRIDE, C_IN, k_pad)
    w_comb, b_comb = jax.block_until_ready((w_comb, b_comb))

    fwd = jax.jit(functools.partial(cross_embed_forward,
                                    kernel_sizes=KERNELS, stride=STRIDE))
    y = jax.block_until_ready(fwd(w_comb, b_comb, x))

    assert y.shape == (B, DIM_OUT, H // STRIDE, W // STRIDE), y.shape
    assert bool(jnp.all(jnp.isfinite(y)))

    y_ref = cross_embed_reference(params, x, KERNELS, STRIDE)
    max_err = float(jnp.max(jnp.abs(y - y_ref)))
    assert max_err < 5e-2, f"max abs err {max_err}"
    print("KERNEL_OK")
</pallas_src>

<mosaic_0001>
module attributes {stable_mosaic.version = 11 : i64} {
  func.func @_matmul_bias_kernel(%arg0: i32, %arg1: memref<64x256xbf16, #tpu.memory_space<vmem>>, %arg2: memref<256x128xbf16, #tpu.memory_space<vmem>>, %arg3: memref<1x128xf32, #tpu.memory_space<vmem>>, %arg4: memref<64x128xf32, #tpu.memory_space<vmem>>) attributes {dimension_semantics = [#tpu.dimension_semantics<parallel>], iteration_bounds = array<i64: 2>, scalar_prefetch = 0 : i64, scratch_operands = 0 : i64, tpu.core_type = #tpu.core_type<tc>, window_params = [{transform_indices = @transform_0, window_bounds = array<i64: 64, 256>}, {pipeline_mode = #tpu.pipeline_mode<synchronous>, transform_indices = @transform_1, window_bounds = array<i64: 256, 128>}, {pipeline_mode = #tpu.pipeline_mode<synchronous>, transform_indices = @transform_2, window_bounds = array<i64: 1, 128>}, {transform_indices = @transform_3, window_bounds = array<i64: 64, 128>}]} {
    %c0 = arith.constant 0 : index
    %c0_0 = arith.constant 0 : index
    %0 = vector.load %arg1[%c0, %c0_0] : memref<64x256xbf16, #tpu.memory_space<vmem>>, vector<64x256xbf16>
    %c0_1 = arith.constant 0 : index
    %c0_2 = arith.constant 0 : index
    %1 = vector.load %arg2[%c0_1, %c0_2] : memref<256x128xbf16, #tpu.memory_space<vmem>>, vector<256x128xbf16>
    %cst = arith.constant dense<0.000000e+00> : vector<64x128xf32>
    %2 = tpu.matmul %0, %1, %cst {dimension_numbers = #tpu.dot_dimension_numbers<[1], [0], [0], [1], [0, 0, 1, 1], [], []>} : vector<64x256xbf16>, vector<256x128xbf16>, vector<64x128xf32> -> vector<64x128xf32>
    %c0_3 = arith.constant 0 : index
    %c0_4 = arith.constant 0 : index
    %3 = vector.load %arg3[%c0_3, %c0_4] : memref<1x128xf32, #tpu.memory_space<vmem>>, vector<1x128xf32>
    %4 = vector.broadcast %3 : vector<1x128xf32> to vector<64x128xf32>
    %5 = arith.addf %2, %4 : vector<64x128xf32>
    %c0_5 = arith.constant 0 : index
    %c0_6 = arith.constant 0 : index
    %6 = vector.load %arg4[%c0_5, %c0_6] : memref<64x128xf32, #tpu.memory_space<vmem>>, vector<64x128xf32>
    tpu.vector_store %arg4[%c0_5, %c0_6], %5 {strides = array<i32>} : memref<64x128xf32, #tpu.memory_space<vmem>>, vector<64x128xf32>,
    return
  }
  func.func @transform_0(%arg0: i32) -> (i32, i32) {
    %c0_i32 = arith.constant 0 : i32
    %c0_i32_0 = arith.constant 0 : i32
    return %arg0, %c0_i32 : i32, i32
  }
  func.func @transform_1(%arg0: i32) -> (i32, i32) {
    %c0_i32 = arith.constant 0 : i32
    %c0_i32_0 = arith.constant 0 : i32
    %c0_i32_1 = arith.constant 0 : i32
    return %c0_i32, %c0_i32_0 : i32, i32
  }
  func.func @transform_2(%arg0: i32) -> (i32, i32) {
    %c0_i32 = arith.constant 0 : i32
    %c0_i32_0 = arith.constant 0 : i32
    %c0_i32_1 = arith.constant 0 : i32
    return %c0_i32, %c0_i32_0 : i32, i32
  }
  func.func @transform_3(%arg0: i32) -> (i32, i32) {
    %c0_i32 = arith.constant 0 : i32
    %c0_i32_0 = arith.constant 0 : i32
    return %arg0, %c0_i32 : i32, i32
  }
}

</mosaic_0001>

<bundles_post_ra>
// kernel: cross_embed_forward.1
= control target key start
LH: loop header
LB: loop body
LE: loop exit
PB: predicated region body
PF: predicated region fallthrough
CT: control target
= control target key end

     0   :  { %8 = vsyncpa [#allocation3], 0  ;;  %s927_s0 = inlined_call_operand.vmem [shape: bf16[128,256], index: 0, kind: input, shape index: {}]   ;;  %s928_s1 = inlined_call_operand.vmem [shape: bf16[256,128], index: 1, kind: input, shape index: {}]   ;;  %s929_s2 = inlined_call_operand.vmem [shape: f32[1,128], index: 2, kind: input, shape index: {}]   ;;  %s930_s3 = inlined_call_operand.hbm [shape: f32[128,128], index: 3, kind: output, shape index: {}]  }
   0x1   :  { %10 = vsyncpa [#allocation3 + $0x1], 0  ;;  %s760_s12 = smov 0   ;;  %s762_s13 = smov 0  }
   0x2   :  { %s764_s14 = smov 0   ;;  %s766_s15 = smov 0  }
   0x3 LB: > { %s781_s16 = sadd.s32 4294967295, %s735_s15   ;;  %s508_s17 = sadd.s32 4294967294, %s735_s15   ;;  %s735_s15 = sphi %s766_s15, %s936_s15   ;;  %s731_s14 = sphi %s764_s14, %s935_s14   ;;  %s727_s13 = sphi %s762_s13, %s934_s13   ;;  %s723_s12 = sphi %s760_s12, %s933_s12  }
   0x4   : > { %s785_s18 = sadd.s32 1, %s735_s15   ;;  %s91_s19 = sadd.s32 1, %s731_s14 }
   0x5   : > { %s88_s20 = ssub.s32 %s735_s15, %s785_s18  ;;  %p101_p0 = scmp.ne.s32.totalorder %s731_s14, %s727_s13 }
   0x6   : > { %p89_p1 = scmp.eq.s32.totalorder %s88_s20, 0  ;;  %p102_p2 = scmp.eq.s32.totalorder %s781_s16, 1 }
   0x7   : > { %p107_p3 = scmp.ne.s32.totalorder %s727_s13, %s723_s12  ;;  %p108_p4 = scmp.eq.s32.totalorder %s508_s17, 1 }
   0x8   : > { %s796_s21 = scalar_select %p89_p1, %s731_s14, %s91_s19  }
   0x9   : > { %p798_p5 = por %p102_p2, %p101_p0  ;;  %p802_p6 = por %p108_p4, %p107_p3 }
   0xa   : > { %p511_p7 = scmp.ge.s32.totalorder %s735_s15, 1  ;;  %p142_p8 = scmp.lt.s32.totalorder %s735_s15, 3 }
   0xc   : > { %p143_p9 = pnand %p511_p7, %p142_p8 }
   0xd   : > { %v645_v0 = vld [vmem:[%s928_s1 + $0x40] sm:$0xff] (!%p143_p9)   ;;  %s513_s26 = sshll.u32 (!%p143_p9), %s781_s16, 3  ;;  %v647_v2 = vld [vmem:[%s928_s1 + $0x48] sm:$0xff] (!%p143_p9)   ;;  %v649_v4 = vld [vmem:[%s928_s1 + $0x50] sm:$0xff] (!%p143_p9)   ;;  %s164_s25 = sand.u32 (!%p143_p9), 1, %s727_s13  }
   0xe   : > { %146 = sbr.rel (%p143_p9) target bundleno = 288 (0x120), region = 32  ;;  %v646_v1 = vld [vmem:[%s928_s1] sm:$0xff] (!%p143_p9)   ;;  %548 = vmatprep.subr.bf16.mxu0 (!%p143_p9), %v645_v0  ;;  %588 = vmatprep.subr.bf16.mxu1 (!%p143_p9), %v645_v0  ;;  %v648_v3 = vld [vmem:[%s928_s1 + $0x8] sm:$0xff] (!%p143_p9)   ;;  %p168_p10 = scmp.lt.s32.totalorder (!%p143_p9), %s513_s26, 15  ;;  %v650_v5 = vld [vmem:[%s928_s1 + $0x10] sm:$0xff] (!%p143_p9)  }
   0xf   : > { %549 = vmatpush3.bf16.msra.mxu0 (!%p143_p9), %v646_v1  ;;  %596 = vmatpush3.bf16.msra.mxu1 (!%p143_p9), %v646_v1  ;;  %v651_v6 = vld [vmem:[%s928_s1 + $0x58] sm:$0xff] (!%p143_p9)   ;;  %v653_v8 = vld [vmem:[%s928_s1 + $0x60] sm:$0xff] (!%p143_p9)   ;;  %v655_v10 = vld [vmem:[%s928_s1 + $0x68] sm:$0xff] (!%p143_p9)   ;;  %s512_s27 = sshll.u32 (!%p143_p9), %s164_s25, 6  ;;  %s547_s4 = sshll.u32 (!%p143_p9), %s781_s16, 10 }
  0x10   : > { %550 = vmatprep.subr.bf16.mxu0 (!%p143_p9), %v647_v2  ;;  %589 = vmatprep.subr.bf16.mxu1 (!%p143_p9), %v647_v2  ;;  %v652_v7 = vld [vmem:[%s928_s1 + $0x18] sm:$0xff] (!%p143_p9)   ;;  %v654_v9 = vld [vmem:[%s928_s1 + $0x20] sm:$0xff] (!%p143_p9)   ;;  %v656_v13 = vld [vmem:[%s928_s1 + $0x28] sm:$0xff] (!%p143_p9)   ;;  %s880_s7 = scalar_lea.hbm (!%p143_p9), %s930_s3, %s547_s4  ;;  %s886_s16 = scalar_lea.sflag (!%p143_p9), [#allocation3], %s164_s25 }
  0x11   : > { %v657_v14 = vld [vmem:[%s928_s1 + $0x70] sm:$0xff] (!%p143_p9)   ;;  %v659_v16 = vld [vmem:[%s928_s1 + $0x78] sm:$0xff] (!%p143_p9)   ;;  %v516_v26 = vld [vmem:[%s929_s2] ss:$0 sm:$0xff] (!%p143_p9)  ;;  %s737_s9 = smov (!%p143_p9), [#allocation2]  }
  0x12   : > { %v658_v15 = vld [vmem:[%s928_s1 + $0x30] sm:$0xff] (!%p143_p9)   ;;  %v660_v17 = vld [vmem:[%s928_s1 + $0x38] sm:$0xff] (!%p143_p9)   ;;  %s677_s10 = sshll.u32 (!%p143_p9), %s737_s9, 4  ;;  %s678_s10 = int_to_ptr.vmem [resolvable:$false] %s677_s10 }
  0x13   : > { %551 = vmatpush3.bf16.msra.mxu0 (!%p143_p9), %v648_v3  ;;  %597 = vmatpush3.bf16.msra.mxu1 (!%p143_p9), %v648_v3  ;;  %s679_s11 = scalar_lea.vmem (!%p143_p9), %s678_s10, 2048 }
  0x14   : > { %552 = vmatprep.subr.bf16.mxu0 (!%p143_p9), %v649_v4  ;;  %590 = vmatprep.subr.bf16.mxu1 (!%p143_p9), %v649_v4 }
  0x15   : > { %s938_s26 = smov (!%p168_p10, %s513_s26), 15 }
  0x16   : > { %s546_s20 = sshll.u32 %s938_s26, 3 }
  0x17   : > { %553 = vmatpush3.bf16.msra.mxu0 %v650_v5  ;;  %598 = vmatpush3.bf16.msra.mxu1 %v650_v5  ;;  %s839_s29 = scalar_lea.vmem %s927_s0, %s546_s20 }
  0x18   : > { %554 = vmatprep.subr.bf16.mxu0 %v651_v6  ;;  %591 = vmatprep.subr.bf16.mxu1 %v651_v6  ;;  %v663_v11 = vld [vmem:[%s839_s29 + $0x4] ss:$8 sps:$4 sm:$0xff]   ;;  %v661_v18 = vld [vmem:[%s839_s29] ss:$8 sps:$4 sm:$0xff]   ;;  %v667_v20 = vld [vmem:[%s839_s29 + $0x14] ss:$8 sps:$4 sm:$0xff]  }
  0x19   : > { %v666_v12 = vld [vmem:[%s839_s29 + $0x24] ss:$8 sps:$4 sm:$0xff]   ;;  %391 = vmatprep.mubr.bf16.mxu0 %v663_v11  ;;  %v664_v19 = vld [vmem:[%s839_s29 + $0x20] ss:$8 sps:$4 sm:$0xff]   ;;  %v669_v21 = vld [vmem:[%s839_s29 + $0x34] ss:$8 sps:$4 sm:$0xff]  }
  0x1a   : > { %407 = vmatprep.mubr.bf16.mxu1 %v666_v12  ;;  %v671_v22 = vld [vmem:[%s839_s29 + $0x10] ss:$8 sps:$4 sm:$0xff]  }
  0x1b   : > { %555 = vmatpush3.bf16.msra.mxu0 %v652_v7  ;;  %599 = vmatpush3.bf16.msra.mxu1 %v652_v7  ;;  %v672_v23 = vld [vmem:[%s839_s29 + $0x30] ss:$8 sps:$4 sm:$0xff]   ;;  %s166_s29 = scalar_lea.vmem [#allocation2], %s512_s27 }
  0x1c   : > { %556 = vmatprep.subr.bf16.mxu0 %v653_v8  ;;  %592 = vmatprep.subr.bf16.mxu1 %v653_v8  ;;  %s446_s26 = sshll.u32 %s166_s29, 4  ;;  %s882_s26 = int_to_ptr.vmem [resolvable:$true] %s446_s26 }
  0x1d   : > { %s673_s8 = scalar_lea.vmem %s882_s26, 1024  ;;  %p680_p0 = scmp.lt.s32.totalorder %s882_s26, %s678_s10 }
  0x1e   : > { %p674_p11 = scmp.ne.s32.totalorder %s882_s26, %s673_s8  ;;  %p681_p1 = scmp.lt.s32.totalorder %s679_s11, %s673_s8 }
  0x1f   : > { %557 = vmatpush3.bf16.msra.mxu0 %v654_v9  ;;  %600 = vmatpush3.bf16.msra.mxu1 %v654_v9 }
  0x20   : > { %558 = vmatprep.subr.bf16.mxu0 %v655_v10  ;;  %593 = vmatprep.subr.bf16.mxu1 %v655_v10  ;;  %p675_p12 = pnand %p674_p11, %p798_p5  ;;  %p682_p2 = por %p681_p1, %p680_p0 }
  0x22   : > { %p676_p13 = pneg %p675_p12 }
  0x23   : > { %559 = vmatpush3.bf16.msra.mxu0 %v656_v13  ;;  %601 = vmatpush3.bf16.msra.mxu1 %v656_v13 }
  0x24   : > { %560 = vmatprep.subr.bf16.mxu0 %v657_v14  ;;  %594 = vmatprep.subr.bf16.mxu1 %v657_v14  ;;  %p683_p3 = pnand %p682_p2, %p676_p13 }
  0x27   : > { %561 = vmatpush3.bf16.msra.mxu0 %v658_v15  ;;  %602 = vmatpush3.bf16.msra.mxu1 %v658_v15 }
  0x28   : > { %562 = vmatprep.subr.bf16.mxu0 %v659_v16  ;;  %595 = vmatprep.subr.bf16.mxu1 %v659_v16 }
  0x2b   : > { %563 = vmatpush3.bf16.msra.mxu0 %v660_v17  ;;  %603 = vmatpush3.bf16.msra.mxu1 %v660_v17 }
  0x2e   : > { %392 = vmatmul.mubr.bf16.vlgmr.msra.gmra.mrb[0].mxu0 %v661_v18  ;;  %408 = vmatmul.mubr.bf16.vlgmr.msra.gmra.mrb[0].mxu1 %v664_v19 }
  0x2f   : > { %399 = vmatprep.mubr.bf16.mxu0 %v667_v20  ;;  %415 = vmatprep.mubr.bf16.mxu1 %v669_v21 }
  0x36   : > { %400 = vmatmul.mubr.bf16.gmra.mrb[4].mxu0 %v671_v22  ;;  %416 = vmatmul.mubr.bf16.gmra.mrb[4].mxu1 %v672_v23 }
 0x101   : > { %v564_v24 = vpop.f32.mrb[0].mxu0  ;;  %v576_v25 = vpop.f32.mrb[0].mxu1 }
 0x102   : > { %v565_v27 = vpop.f32.mrb[1].mxu0  ;;  %v577_v28 = vpop.f32.mrb[1].mxu1 }
 0x103   : > { %v566_v29 = vadd.f32 %v565_v27, %v564_v24  ;;  %v578_v30 = vadd.f32 %v577_v28, %v576_v25  ;;  %v567_v31 = vpop.f32.mrb[2].mxu0  ;;  %v579_v32 = vpop.f32.mrb[2].mxu1 }
 0x104   : > { %v568_v33 = vpop.f32.mrb[3].mxu0  ;;  %v580_v34 = vpop.f32.mrb[3].mxu1 }
 0x105   : > { %v394_v35 = vadd.f32 %v566_v29, %v516_v26  ;;  %v410_v36 = vadd.f32 %v578_v30, %v516_v26  ;;  %v569_v37 = vadd.f32 %v568_v33, %v567_v31  ;;  %v581_v38 = vadd.f32 %v580_v34, %v579_v32 }
 0x107   : > { %424 = vst [vmem:[%s166_s29] sm:$0xff] %v394_v35  ;;  %428 = vst [vmem:[%s166_s29 + $0x20] sm:$0xff] %v410_v36  ;;  %v397_v39 = vadd.f32 %v569_v37, %v516_v26  ;;  %v413_v40 = vadd.f32 %v581_v38, %v516_v26 }
 0x109   : > { %425 = vst [vmem:[%s166_s29 + $0x8] sm:$0xff] %v397_v39  ;;  %429 = vst [vmem:[%s166_s29 + $0x28] sm:$0xff] %v413_v40  ;;  %v570_v41 = vpop.f32.mrb[4].mxu0  ;;  %v582_v42 = vpop.f32.mrb[4].mxu1 }
 0x10a   : > { %v571_v43 = vpop.f32.mrb[5].mxu0  ;;  %v583_v44 = vpop.f32.mrb[5].mxu1 }
 0x10b   : > { %v572_v45 = vadd.f32 %v571_v43, %v570_v41  ;;  %v584_v46 = vadd.f32 %v583_v44, %v582_v42  ;;  %v573_v47 = vpop.f32.mrb[6].mxu0  ;;  %v585_v48 = vpop.f32.mrb[6].mxu1 }
 0x10c   : > { %v574_v49 = vpop.f32.mrb[7].mxu0  ;;  %v586_v50 = vpop.f32.mrb[7].mxu1 }
 0x10d   : > { %v402_v51 = vadd.f32 %v572_v45, %v516_v26  ;;  %v418_v52 = vadd.f32 %v584_v46, %v516_v26  ;;  %v575_v53 = vadd.f32 %v574_v49, %v573_v47  ;;  %v587_v54 = vadd.f32 %v586_v50, %v585_v48 }
 0x10f   : > { %426 = vst [vmem:[%s166_s29 + $0x10] sm:$0xff] %v402_v51  ;;  %430 = vst [vmem:[%s166_s29 + $0x30] sm:$0xff] %v418_v52  ;;  %v405_v55 = vadd.f32 %v575_v53, %v516_v26  ;;  %v421_v56 = vadd.f32 %v587_v54, %v516_v26 }
 0x111   : > { %427 = vst [vmem:[%s166_s29 + $0x18] sm:$0xff] %v405_v55  ;;  %431 = vst [vmem:[%s166_s29 + $0x38] sm:$0xff] %v421_v56 }
 0x112   : > { %686 = shalt.err (!%p683_p3)
}
 0x113   : > { %s687_s17 = scalar_lea.hbm %s880_s7, 1024  ;;  %s691_s24 = scalar_lea.hbm %s930_s3, 2048 }
 0x114   : > { %p688_p4 = scmp.ne.s32.totalorder %s880_s7, %s687_s17  ;;  %p692_p9 = scmp.lt.u32.totalorder %s880_s7, %s930_s3 }
 0x115   : > { %p693_p10 = scmp.lt.u32.totalorder %s691_s24, %s687_s17  ;;  %p695_p12 = scmp.lt.u32.totalorder %s687_s17, %s880_s7 }
 0x116   : > { %p689_p7 = pnand %p688_p4, %p798_p5 }
 0x117   : > { %p694_p11 = por %p693_p10, %p692_p9 }
 0x118   : > { %p690_p8 = pneg %p689_p7 }
 0x119   : > { %p696_p13 = por %p695_p12, %p694_p11 }
 0x11b   : > { %p697_p0 = pnand %p696_p13, %p690_p8 }
 0x11d   : > { %700 = shalt.err (!%p697_p0)
}
 0x11e   : > { %s738_s28 = smov 128   ;;  %s739_s30 = smov 8  }
 0x11f   : > { %604 = dma.vmem_to_hbm [thread:$0]  (%p798_p5), %s882_s26, 1024, %s880_s7, %s886_s16, %s738_s28, %s738_s28, %s739_s30  }
 0x120 PF: > { %p610_p1 = scmp.ge.s32.totalorder %s735_s15, 2  ;;  %s461_s29 = sand.u32 1, %s723_s12  }
 0x121   : > { %s462_s4 = scalar_lea.sflag [#allocation3], %s461_s29 }
 0x122   : > { %p607_p2 = pnand %p610_p1, %p802_p6 }
 0x124   : > { %718 = dma.done.wait (!%p607_p2), %s462_s4, 1024  }
 0x125   : > { %720 = vsyncadd (!%p607_p2), %s462_s4, 4294966272  ;;  %p13_p3 = scmp.ge.s32.totalorder %s785_s18, 4   ;;  %s933_s12 = smov %s727_s13 }
 0x126   : > { %s934_s13 = smov %s731_s14  ;;  %s935_s14 = smov %s796_s21 }
 0x127   : > { %s936_s15 = smov %s785_s18  ;;  %15 = sbr.rel (!%p13_p3) target bundleno = 3 (0x3), region = 67 }
 0x12e   :  { %467 = vsyncpa [#allocation3], 1 }
 0x12f   :  { %469 = vsyncpa [#allocation3 + $0x1], 1 }

</bundles_post_ra>
